<compile_context>
chip_gen: v7x
topology: tpu7x:2x2x1
jax: 0.10.0
libtpu: 0.0.40
codegen_flags: <defaults>
</compile_context>

<pallas_src>
import functools

import jax
import jax.numpy as jnp
from jax import lax
from jax.experimental import pallas as pl
from jax.experimental.pallas import tpu as pltpu


def _round_up(a, b):
    return (a + b - 1) // b * b


def _pick_tile_ff(d_ff, want=512):
    """Largest 128-multiple chunk of d_ff (or the whole thing if small/odd)."""
    if d_ff <= want:
        return d_ff
    for cand in (want, 256, 128):
        if d_ff % cand == 0:
            return cand
    return d_ff  # fall back to weight-resident along d_ff


def ffn_kernel(x_ref, w1_ref, b1_ref, w2_ref, b2_ref, o_ref, acc_ref):
    # x_ref:  (tile_n, d_model)      compute dtype (e.g. bf16)
    # w1_ref: (tile_ff, d_model)     nn.Linear layout slab of W1
    # b1_ref: (1, tile_ff)           fp32
    # w2_ref: (d_model, tile_ff)     nn.Linear layout slab of W2
    # b2_ref: (1, d_model)           fp32
    # o_ref:  (tile_n, d_model)      output dtype
    # acc_ref:(tile_n, d_model)      fp32 accumulator (persists across k)
    k = pl.program_id(1)

    @pl.when(k == 0)
    def _():
        acc_ref[...] = jnp.zeros_like(acc_ref)

    x = x_ref[...]
    # h = relu(x @ W1[k_chunk]^T + b1[k_chunk])   (contract on in_features axis)
    h = lax.dot_general(
        x, w1_ref[...],
        dimension_numbers=(((1,), (1,)), ((), ())),
        preferred_element_type=jnp.float32,
    ) + b1_ref[...]
    h = jnp.maximum(h, 0.0)          # ReLU on VPU
    # dropout (eval mode) == identity
    # Accumulate partial second matmul: h @ W2[:, k_chunk]^T
    acc_ref[...] += lax.dot_general(
        h.astype(w2_ref.dtype), w2_ref[...],
        dimension_numbers=(((1,), (1,)), ((), ())),
        preferred_element_type=jnp.float32,
    )

    @pl.when(k == pl.num_programs(1) - 1)
    def _():
        o_ref[...] = (acc_ref[...] + b2_ref[...]).astype(o_ref.dtype)


@functools.partial(jax.jit, static_argnames=("tile_n", "tile_ff", "compute_dtype"))
def positionwise_feedforward(x, w1, b1, w2, b2, *, tile_n=256, tile_ff=None,
                             compute_dtype=jnp.bfloat16):
    """x: (batch, seq, d_model); w1: (d_ff, d_model); b1: (d_ff,);
    w2: (d_model, d_ff); b2: (d_model,)  (same conventions as nn.Linear)."""
    batch, seq, d_model = x.shape
    d_ff = w1.shape[0]
    n = batch * seq
    out_dtype = x.dtype

    # ---- tile selection -----------------------------------------------------
    if tile_ff is None:
        tile_ff = _pick_tile_ff(d_ff)
    assert d_ff % tile_ff == 0
    if n <= tile_n:
        n_pad = _round_up(n, 16)      # satisfy sublane granularity (bf16/f32)
        tile_n_eff = n_pad
    else:
        tile_n_eff = tile_n
        n_pad = _round_up(n, tile_n_eff)

    # ---- operand prep (no weight transposes; cast matmul inputs) -----------
    x2 = x.reshape(n, d_model).astype(compute_dtype)
    if n_pad != n:
        x2 = jnp.pad(x2, ((0, n_pad - n), (0, 0)))
    w1c = w1.astype(compute_dtype)                    # (d_ff, d_model)
    w2c = w2.astype(compute_dtype)                    # (d_model, d_ff)
    b1r = b1.reshape(1, d_ff).astype(jnp.float32)
    b2r = b2.reshape(1, d_model).astype(jnp.float32)

    n_tiles = n_pad // tile_n_eff
    k_tiles = d_ff // tile_ff

    # ---- VMEM budget / cost hints -------------------------------------------
    itm = jnp.dtype(compute_dtype).itemsize
    out_itm = jnp.dtype(out_dtype).itemsize
    per_step = (tile_n_eff * d_model * itm            # x tile
                + tile_ff * d_model * itm             # W1 slab
                + tile_ff * 4                         # b1 slab
                + d_model * tile_ff * itm             # W2 slab
                + d_model * 4                         # b2
                + tile_n_eff * d_model * out_itm)     # out tile
    vmem_bytes = 2 * per_step + tile_n_eff * d_model * 4   # double-buffer + acc
    vmem_limit = int(min(64 << 20, max(2 * vmem_bytes, 4 << 20)))

    cost = pl.CostEstimate(
        flops=2 * 2 * n_pad * d_model * d_ff,
        transcendentals=0,
        bytes_accessed=(x2.size * itm + w1c.size * itm + w2c.size * itm
                        + b1r.size * 4 + b2r.size * 4
                        + n_pad * d_model * out_itm),
    )

    out = pl.pallas_call(
        ffn_kernel,
        out_shape=jax.ShapeDtypeStruct((n_pad, d_model), out_dtype),
        grid_spec=pltpu.PrefetchScalarGridSpec(
            num_scalar_prefetch=0,
            grid=(n_tiles, k_tiles),
            in_specs=[
                pl.BlockSpec((tile_n_eff, d_model), lambda i, k: (i, 0)),  # x
                pl.BlockSpec((tile_ff, d_model), lambda i, k: (k, 0)),     # W1 slab
                pl.BlockSpec((1, tile_ff), lambda i, k: (0, k)),           # b1 slab
                pl.BlockSpec((d_model, tile_ff), lambda i, k: (0, k)),     # W2 slab
                pl.BlockSpec((1, d_model), lambda i, k: (0, 0)),           # b2
            ],
            out_specs=pl.BlockSpec((tile_n_eff, d_model), lambda i, k: (i, 0)),
            scratch_shapes=[pltpu.VMEM((tile_n_eff, d_model), jnp.float32)],
        ),
        compiler_params=pltpu.CompilerParams(
            dimension_semantics=("parallel", "arbitrary"),
            vmem_limit_bytes=vmem_limit,
        ),
        cost_estimate=cost,
    )(x2, w1c, b1r, w2c, b2r)

    return out[:n].reshape(batch, seq, d_model)


def init_linear_params(key, in_features, out_features, dtype=jnp.float32):
    # Deterministic init mimicking nn.Linear default: U(-1/sqrt(fan_in), 1/sqrt(fan_in))
    kw, kb = jax.random.split(key)
    bound = 1.0 / (in_features ** 0.5)
    w = jax.random.uniform(kw, (out_features, in_features), dtype,
                           minval=-bound, maxval=bound)
    b = jax.random.uniform(kb, (out_features,), dtype,
                           minval=-bound, maxval=bound)
    return w, b


if __name__ == "__main__":
    batch, seq, d_model, d_ff = 2, 8, 32, 64

    key = jax.random.PRNGKey(0)
    kx, k1, k2 = jax.random.split(key, 3)

    x = jax.random.normal(kx, (batch, seq, d_model), jnp.float32)
    w1, b1 = init_linear_params(k1, d_model, d_ff)
    w2, b2 = init_linear_params(k2, d_ff, d_model)

    # Reference in plain JAX (eval-mode dropout == identity)
    ref = jnp.maximum(x @ w1.T + b1, 0.0) @ w2.T + b2

    # Exact fp32 path — tight tolerance
    y32 = positionwise_feedforward(x, w1, b1, w2, b2, compute_dtype=jnp.float32)
    y32 = jax.block_until_ready(y32)
    assert y32.shape == (batch, seq, d_model)
    assert jnp.allclose(y32, ref, atol=1e-5, rtol=1e-5)

    # Fast bf16-MXU / fp32-accumulate path (default) — bf16-level tolerance
    y = positionwise_feedforward(x, w1, b1, w2, b2)
    y = jax.block_until_ready(y)
    assert y.shape == (batch, seq, d_model)
    assert jnp.allclose(y, ref, atol=5e-2, rtol=5e-2)

    print("KERNEL_OK")
</pallas_src>

<mosaic_0001>
module attributes {stable_mosaic.version = 11 : i64} {
  func.func @ffn_kernel(%arg0: i32, %arg1: i32, %arg2: memref<16x32xf32, #tpu.memory_space<vmem>>, %arg3: memref<64x32xf32, #tpu.memory_space<vmem>>, %arg4: memref<1x64xf32, #tpu.memory_space<vmem>>, %arg5: memref<32x64xf32, #tpu.memory_space<vmem>>, %arg6: memref<1x32xf32, #tpu.memory_space<vmem>>, %arg7: memref<16x32xf32, #tpu.memory_space<vmem>>, %arg8: memref<16x32xf32, #tpu.memory_space<vmem>>) attributes {dimension_semantics = [#tpu.dimension_semantics<parallel>, #tpu.dimension_semantics<arbitrary>], iteration_bounds = array<i64: 1, 1>, scalar_prefetch = 0 : i64, scratch_operands = 1 : i64, tpu.core_type = #tpu.core_type<tc>, window_params = [{transform_indices = @transform_0, window_bounds = array<i64: 16, 32>}, {transform_indices = @transform_1, window_bounds = array<i64: 64, 32>}, {transform_indices = @transform_2, window_bounds = array<i64: 1, 64>}, {transform_indices = @transform_3, window_bounds = array<i64: 32, 64>}, {pipeline_mode = #tpu.pipeline_mode<synchronous>, transform_indices = @transform_4, window_bounds = array<i64: 1, 32>}, {transform_indices = @transform_5, window_bounds = array<i64: 16, 32>}]} {
    %c0_i32 = arith.constant 0 : i32
    %0 = arith.cmpi eq, %arg1, %c0_i32 : i32
    %1 = arith.extui %0 : i1 to i32
    %c0_i32_0 = arith.constant 0 : i32
    %2 = arith.cmpi ne, %1, %c0_i32_0 : i32
    scf.if %2 {
      %cst_16 = arith.constant 0.000000e+00 : f32
      %19 = vector.broadcast %cst_16 : f32 to vector<16x32xf32>
      %c0_17 = arith.constant 0 : index
      %c0_18 = arith.constant 0 : index
      %20 = vector.load %arg8[%c0_17, %c0_18] : memref<16x32xf32, #tpu.memory_space<vmem>>, vector<16x32xf32>
      tpu.vector_store %arg8[%c0_17, %c0_18], %19 {strides = array<i32>} : memref<16x32xf32, #tpu.memory_space<vmem>>, vector<16x32xf32>,
    } else {
    }
    %c0 = arith.constant 0 : index
    %c0_1 = arith.constant 0 : index
    %3 = vector.load %arg2[%c0, %c0_1] : memref<16x32xf32, #tpu.memory_space<vmem>>, vector<16x32xf32>
    %c0_2 = arith.constant 0 : index
    %c0_3 = arith.constant 0 : index
    %4 = vector.load %arg3[%c0_2, %c0_3] : memref<64x32xf32, #tpu.memory_space<vmem>>, vector<64x32xf32>
    %cst = arith.constant dense<0.000000e+00> : vector<16x64xf32>
    %5 = tpu.matmul %3, %4, %cst {dimension_numbers = #tpu.dot_dimension_numbers<[1], [1], [0], [0], [0, 0, 1, 0], [], []>} : vector<16x32xf32>, vector<64x32xf32>, vector<16x64xf32> -> vector<16x64xf32>
    %c0_4 = arith.constant 0 : index
    %c0_5 = arith.constant 0 : index
    %6 = vector.load %arg4[%c0_4, %c0_5] : memref<1x64xf32, #tpu.memory_space<vmem>>, vector<1x64xf32>
    %7 = vector.broadcast %6 : vector<1x64xf32> to vector<16x64xf32>
    %8 = arith.addf %5, %7 : vector<16x64xf32>
    %cst_6 = arith.constant 0.000000e+00 : f32
    %9 = vector.broadcast %cst_6 : f32 to vector<16x64xf32>
    %10 = arith.maximumf %8, %9 : vector<16x64xf32>
    %c0_7 = arith.constant 0 : index
    %c0_8 = arith.constant 0 : index
    %11 = vector.load %arg8[%c0_7, %c0_8] : memref<16x32xf32, #tpu.memory_space<vmem>>, vector<16x32xf32>
    %c0_9 = arith.constant 0 : index
    %c0_10 = arith.constant 0 : index
    %12 = vector.load %arg5[%c0_9, %c0_10] : memref<32x64xf32, #tpu.memory_space<vmem>>, vector<32x64xf32>
    %cst_11 = arith.constant dense<0.000000e+00> : vector<16x32xf32>
    %13 = tpu.matmul %10, %12, %cst_11 {dimension_numbers = #tpu.dot_dimension_numbers<[1], [1], [0], [0], [0, 0, 1, 0], [], []>} : vector<16x64xf32>, vector<32x64xf32>, vector<16x32xf32> -> vector<16x32xf32>
    %14 = arith.addf %11, %13 : vector<16x32xf32>
    %c0_12 = arith.constant 0 : index
    %c0_13 = arith.constant 0 : index
    %15 = vector.load %arg8[%c0_12, %c0_13] : memref<16x32xf32, #tpu.memory_space<vmem>>, vector<16x32xf32>
    tpu.vector_store %arg8[%c0_12, %c0_13], %14 {strides = array<i32>} : memref<16x32xf32, #tpu.memory_space<vmem>>, vector<16x32xf32>,
    %c0_i32_14 = arith.constant 0 : i32
    %16 = arith.cmpi eq, %arg1, %c0_i32_14 : i32
    %17 = arith.extui %16 : i1 to i32
    %c0_i32_15 = arith.constant 0 : i32
    %18 = arith.cmpi ne, %17, %c0_i32_15 : i32
    scf.if %18 {
      %c0_16 = arith.constant 0 : index
      %c0_17 = arith.constant 0 : index
      %19 = vector.load %arg8[%c0_16, %c0_17] : memref<16x32xf32, #tpu.memory_space<vmem>>, vector<16x32xf32>
      %c0_18 = arith.constant 0 : index
      %c0_19 = arith.constant 0 : index
      %20 = vector.load %arg6[%c0_18, %c0_19] : memref<1x32xf32, #tpu.memory_space<vmem>>, vector<1x32xf32>
      %21 = vector.broadcast %20 : vector<1x32xf32> to vector<16x32xf32>
      %22 = arith.addf %19, %21 : vector<16x32xf32>
      %c0_20 = arith.constant 0 : index
      %c0_21 = arith.constant 0 : index
      %23 = vector.load %arg7[%c0_20, %c0_21] : memref<16x32xf32, #tpu.memory_space<vmem>>, vector<16x32xf32>
      tpu.vector_store %arg7[%c0_20, %c0_21], %22 {strides = array<i32>} : memref<16x32xf32, #tpu.memory_space<vmem>>, vector<16x32xf32>,
    } else {
    }
    return
  }
  func.func @transform_0(%arg0: i32, %arg1: i32) -> (i32, i32) {
    %c0_i32 = arith.constant 0 : i32
    %c0_i32_0 = arith.constant 0 : i32
    return %arg0, %c0_i32 : i32, i32
  }
  func.func @transform_1(%arg0: i32, %arg1: i32) -> (i32, i32) {
    %c0_i32 = arith.constant 0 : i32
    %c0_i32_0 = arith.constant 0 : i32
    return %arg1, %c0_i32 : i32, i32
  }
  func.func @transform_2(%arg0: i32, %arg1: i32) -> (i32, i32) {
    %c0_i32 = arith.constant 0 : i32
    %c0_i32_0 = arith.constant 0 : i32
    return %c0_i32, %arg1 : i32, i32
  }
  func.func @transform_3(%arg0: i32, %arg1: i32) -> (i32, i32) {
    %c0_i32 = arith.constant 0 : i32
    %c0_i32_0 = arith.constant 0 : i32
    return %c0_i32, %arg1 : i32, i32
  }
  func.func @transform_4(%arg0: i32, %arg1: i32) -> (i32, i32) {
    %c0_i32 = arith.constant 0 : i32
    %c0_i32_0 = arith.constant 0 : i32
    %c0_i32_1 = arith.constant 0 : i32
    return %c0_i32, %c0_i32_0 : i32, i32
  }
  func.func @transform_5(%arg0: i32, %arg1: i32) -> (i32, i32) {
    %c0_i32 = arith.constant 0 : i32
    %c0_i32_0 = arith.constant 0 : i32
    return %arg0, %c0_i32 : i32, i32
  }
}

</mosaic_0001>

<bundles_post_ra>
// kernel: positionwise_feedforward.1
= control target key start
LH: loop header
LB: loop body
LE: loop exit
PB: predicated region body
PF: predicated region fallthrough
CT: control target
= control target key end

     0   :  { %vm25_vm0 = vcmask 261120   ;;  %vm159_vm2 = vcmask 523264   ;;  %s557_s0 = inlined_call_operand.vmem [shape: f32[16,32], index: 0, kind: input, shape index: {}]   ;;  %s558_s1 = inlined_call_operand.vmem [shape: f32[64,32], index: 1, kind: input, shape index: {}]   ;;  %s559_s2 = inlined_call_operand.vmem [shape: f32[1,64], index: 2, kind: input, shape index: {}]   ;;  %s560_s3 = inlined_call_operand.vmem [shape: f32[32,64], index: 3, kind: input, shape index: {}]   ;;  %s561_s4 = inlined_call_operand.vmem [shape: f32[1,32], index: 4, kind: input, shape index: {}]   ;;  %s562_s5 = inlined_call_operand.hbm [shape: f32[16,32], index: 5, kind: output, shape index: {}]  }
   0x1   :  { %v30_v0 = vld [vmem:[%s558_s1] sm:$0xff]  ;;  %v31_v1 = vld [vmem:[%s558_s1 + $0x8] sm:$0xff]  ;;  %v32_v2 = vld [vmem:[%s558_s1 + $0x10] sm:$0xff] }
   0x2   :  { %v353_v3 = vpack.c.bf16 %v31_v1, %v30_v0  ;;  %vm462_vm1 = vmpackc.low %vm25_vm0, %vm25_vm0  ;;  %v33_v5 = vld [vmem:[%s558_s1 + $0x18] sm:$0xff]  ;;  %v28_v7 = vld [vmem:[%s557_s0] sm:$0xff] }
   0x3   :  { %v359_v6 = vpack.c.bf16 %v33_v5, %v32_v2  ;;  %v155_v8 = vld [vmem:[%s560_s3] sm:$0xff]  ;;  %339 = vmatprep.mubr.msk.f32.mxu0 %vm25_vm0, %v28_v7  ;;  %v156_v9 = vld [vmem:[%s560_s3 + $0x8] sm:$0xff]  ;;  %vm485_vm3 = vmpackc.low %vm159_vm2, %vm159_vm2 }
   0x4   :  { %355 = vmatprep.subr.msk.bf16.mxu0 %vm462_vm1, %v353_v3  ;;  %v157_v11 = vld [vmem:[%s560_s3 + $0x10] sm:$0xff]  ;;  %v377_v12 = vpack.c.bf16 %v156_v9, %v155_v8  ;;  %v158_v13 = vld [vmem:[%s560_s3 + $0x18] sm:$0xff] }
   0x5   :  { %358 = vmatpush3.bf16.xpose.msk.msra.mxu0 %vm462_vm1, %v353_v3 }
   0x6   :  { %361 = vmatprep.subr.msk.bf16.mxu0 %vm462_vm1, %v359_v6 }
   0x7   :  { %10 = vsyncpa [#allocation4], 0  ;;  %v34_v14 = vld [vmem:[%s558_s1 + $0x20] sm:$0xff]  ;;  %v35_v15 = vld [vmem:[%s558_s1 + $0x28] sm:$0xff]  ;;  %v383_v16 = vpack.c.bf16 %v158_v13, %v157_v11  ;;  %379 = vmatprep.subr.msk.bf16.mxu1 %vm485_vm3, %v377_v12  ;;  %v417_v22 = vmov 0.0   ;;  %s418_s21 = smov [#allocation3]  }
   0x8   :  { %382 = vmatpush3.bf16.xpose.msk.msra.mxu1 %vm485_vm3, %v377_v12  ;;  %v365_v17 = vpack.c.bf16 %v35_v15, %v34_v14  ;;  %v36_v18 = vld [vmem:[%s558_s1 + $0x30] sm:$0xff]  ;;  %v37_v19 = vld [vmem:[%s558_s1 + $0x38] sm:$0xff]  ;;  %v29_v21 = vld [vmem:[%s557_s0 + $0x8] sm:$0xff]  ;;  %27 = vst.msk [vmem:[#allocation2 + $0x8] sm:$0xff] %vm25_vm0, %v417_v22  ;;  %s278_s22 = sshll.u32 %s418_s21, 4  ;;  %s279_s22 = int_to_ptr.vmem [resolvable:$true] %s278_s22 }
   0x9   :  { %385 = vmatprep.subr.msk.bf16.mxu1 %vm485_vm3, %v383_v16  ;;  %v371_v20 = vpack.c.bf16 %v37_v19, %v36_v18  ;;  %26 = vst.msk [vmem:[#allocation2] sm:$0xff] %vm25_vm0, %v417_v22  ;;  %v289_v23 = vld [vmem:[%s559_s2] ss:$0 sm:$0xff]  ;;  %s393_s23 = scalar_lea.vmem %s279_s22, 256  ;;  %p398_p1 = scmp.lt.s32.totalorder %s279_s22, %s279_s22 }
   0xa   :  { %v306_v36 = vld [vmem:[%s561_s4] ss:$0 sm:$0xff]  ;;  %p394_p0 = scmp.ne.s32.totalorder %s279_s22, %s393_s23  ;;  %p399_p2 = scmp.lt.s32.totalorder %s393_s23, %s393_s23 }
   0xc   :  { %p400_p3 = por %p399_p2, %p398_p1 }
   0xd   :  { %364 = vmatpush3.bf16.xpose.msk.msra.mxu0 %vm462_vm1, %v359_v6 }
   0xe   :  { %367 = vmatprep.subr.msk.bf16.mxu0 %vm462_vm1, %v365_v17  ;;  %p401_p4 = pnand %p400_p3, %p394_p0 }
   0xf   :  { %v154_v30 = vld [vmem:[#allocation2 + $0x8] sm:$0xff] }
  0x10   :  { %388 = vmatpush3.bf16.xpose.msk.msra.mxu1 %vm485_vm3, %v383_v16  ;;  %v153_v31 = vld [vmem:[#allocation2] sm:$0xff] }
  0x15   :  { %370 = vmatpush3.bf16.xpose.msk.msra.mxu0 %vm462_vm1, %v365_v17 }
  0x16   :  { %373 = vmatprep.subr.msk.bf16.mxu0 %vm462_vm1, %v371_v20 }
  0x1d   :  { %376 = vmatpush3.bf16.xpose.msk.msra.mxu0 %vm462_vm1, %v371_v20 }
  0x24   :  { %340 = vmatmul.mubr.msk.f32.vlgmr.msra.gmra.mrb[0].mxu0 %vm25_vm0, %v29_v21 }
  0xf7   :  { %v341_v24 = vpop.f32.mrb[0].mxu0 }
  0xf8   :  { %v148_v25 = vadd.f32 %v341_v24, %v289_v23  ;;  %v142_v26 = vpop.f32.mrb[1].mxu0 }
  0xf9   :  { %v143_v27 = vadd.f32 %v289_v23, %v142_v26 }
  0xfa   :  { %v152_v29 = vmax.f32 %v148_v25, 0.0 }
  0xfb   :  { %v151_v28 = vmax.f32 %v143_v27, 0.0 }
  0xfd   :  { %350 = vmatprep.mubr.msk.f32.mxu1 %vm159_vm2, %v151_v28 }
  0xfe   :  { %351 = vmatmul.mubr.msk.f32.vlgmr.msra.gmra.mrb[0].mxu1 %vm159_vm2, %v152_v29 }
 0x1d1   :  { %v352_v32 = vpop.f32.mrb[0].mxu1 }
 0x1d2   :  { %v254_v33 = vadd.f32 %v352_v32, %v154_v30  ;;  %v244_v34 = vpop.f32.mrb[1].mxu1 }
 0x1d3   :  { %v253_v35 = vadd.f32 %v244_v34, %v153_v31 }
 0x1d4   :  { %256 = vst.msk [vmem:[#allocation2 + $0x8] sm:$0xff] %vm25_vm0, %v254_v33 }
 0x1d5   :  { %255 = vst.msk [vmem:[#allocation2] sm:$0xff] %vm25_vm0, %v253_v35 }
 0x1db   :  { %v261_v37 = vld [vmem:[#allocation2 + $0x8] sm:$0xff] }
 0x1dc   :  { %v260_v38 = vld [vmem:[#allocation2] sm:$0xff]  ;;  %v270_v39 = vadd.f32 %v306_v36, %v261_v37 }
 0x1dd   :  { %v269_v40 = vadd.f32 %v306_v36, %v260_v38 }
 0x1de   :  { %272 = vst.msk [vmem:[#allocation3 + $0x8] sm:$0xff] %vm25_vm0, %v270_v39 }
 0x1df   :  { %271 = vst.msk [vmem:[#allocation3] sm:$0xff] %vm25_vm0, %v269_v40 }
 0x1e0   :  { %404 = shalt.err (!%p401_p4)
}
 0x1e1   :  { %s405_s25 = scalar_lea.hbm %s562_s5, 256 }
 0x1e2   :  { %p406_p5 = scmp.ne.s32.totalorder %s562_s5, %s405_s25  ;;  %p409_p6 = scmp.lt.u32.totalorder %s405_s25, %s562_s5 }
 0x1e4   :  { %p411_p7 = pnand %p409_p6, %p406_p5 }
 0x1e6   :  { %414 = shalt.err (!%p411_p7)
}
 0x1e7   :  { %s419_s30 = smov 128   ;;  %s420_s6 = smov 8  }
 0x1e8   :  { %284 = dma.vmem_to_hbm [thread:$0]  %s279_s22, 256, %s562_s5, [#allocation4], %s419_s30, %s419_s30, %s420_s6  }
 0x1e9   :  { %415 = dma.done.wait [#allocation4], 256  }
 0x1ea   :  { %416 = vsyncadd [#allocation4], 4294967040 }
 0x1eb   :  { %288 = vsyncpa [#allocation4], 1 }

</bundles_post_ra>
